<compile_context>
chip_gen: v7x
topology: tpu7x:2x2x1
jax: 0.10.0
libtpu: 0.0.40
codegen_flags: <defaults>
</compile_context>

<pallas_src>
from functools import partial

import jax
import jax.numpy as jnp
from jax import lax
from jax.experimental import pallas as pl
from jax.experimental.pallas import tpu as pltpu


# ------------------------------------------------------------------ VMEM / tiling helpers

_VMEM_LIMIT_CACHE = None


def _vmem_limit_bytes():
    """Explicit scoped-VMEM limit sized from the chip (v7x: 64 MiB physical), with
    headroom for Mosaic internal scratch."""
    global _VMEM_LIMIT_CACHE
    if _VMEM_LIMIT_CACHE is None:
        cap = 64 * 1024 * 1024  # conservative fallback == v7x physical VMEM
        try:
            cap = int(pltpu.get_tpu_info().vmem_capacity_bytes)
        except Exception:
            pass
        _VMEM_LIMIT_CACHE = int(min(cap * 3 // 4, 96 * 1024 * 1024))
    return _VMEM_LIMIT_CACHE


def _sublane_multiple(dtypes):
    """Row-tile granularity: 8 rows for 4-byte dtypes, 16 for 2-byte, 32 for 1-byte."""
    m = 8
    for dt in dtypes:
        m = max(m, 8 * (4 // jnp.dtype(dt).itemsize))
    return m


def _pick_row_tile(rows, bytes_per_row, sublane, *, fixed_bytes=0, cap=512):
    """Largest row tile whose double-buffered blocks fit ~60% of the VMEM limit."""
    budget = int(_vmem_limit_bytes() * 0.6) - int(fixed_bytes)
    budget = max(budget, bytes_per_row * sublane)
    tile = min(cap, budget // max(bytes_per_row, 1))
    if tile >= rows:
        return rows                                   # single full block (always legal)
    return max(sublane, (tile // sublane) * sublane)


def _pick_dim_tile(dim, pref):
    """Contraction / feature-dim tile: full dim if small, else the largest 128-multiple
    divisor <= pref (so reduction edge blocks never see garbage)."""
    if dim <= pref:
        return dim
    t = (pref // 128) * 128
    while t >= 128:
        if dim % t == 0:
            return t
        t -= 128
    # TODO(synk): large dims not divisible by 128 fall back to one (VMEM-heavy) block.
    return dim


def _mm_params(sem):
    return pltpu.CompilerParams(dimension_semantics=sem,
                                vmem_limit_bytes=_vmem_limit_bytes())


# ------------------------------------------------------ fused RMSNorm + adaLN modulate

def _rmsnorm_modulate_kernel(x_ref, w_ref, shift_ref, scale_ref, o_ref, *, eps):
    x = x_ref[...].astype(jnp.float32)                        # (1, tn, D)
    ms = jnp.mean(x * x, axis=-1, keepdims=True)              # pow(2).mean(-1)
    normed = (x * lax.rsqrt(ms + eps)).astype(x_ref.dtype)    # .type_as(x)
    y = normed.astype(jnp.float32) * w_ref[...].astype(jnp.float32)
    out = y * (1.0 + scale_ref[...].astype(jnp.float32)) + shift_ref[...].astype(jnp.float32)
    o_ref[...] = out.astype(o_ref.dtype)


def rmsnorm_modulate(x, weight, shift, scale, eps=1e-6, *, out_dtype=None):
    """modulate(RMSNorm(x), shift, scale) fused into one pass over x."""
    B, N, D = x.shape
    assert weight.shape == (D,) and shift.shape == (B, D) and scale.shape == (B, D)
    out_dtype = x.dtype if out_dtype is None else out_dtype   # keep model compute dtype

    sub = _sublane_multiple((x.dtype, out_dtype))
    bytes_per_row = 2 * D * (jnp.dtype(x.dtype).itemsize + jnp.dtype(out_dtype).itemsize)
    tn = _pick_row_tile(N, bytes_per_row, sub, cap=1024)

    return pl.pallas_call(
        partial(_rmsnorm_modulate_kernel, eps=eps),
        out_shape=jax.ShapeDtypeStruct((B, N, D), out_dtype),
        grid_spec=pltpu.PrefetchScalarGridSpec(
            num_scalar_prefetch=0,
            grid=(B, pl.cdiv(N, tn)),
            in_specs=[
                pl.BlockSpec((1, tn, D), lambda b, n: (b, n, 0)),
                pl.BlockSpec((1, 1, D), lambda b, n: (0, 0, 0)),   # weight
                pl.BlockSpec((1, 1, D), lambda b, n: (b, 0, 0)),   # shift (per batch)
                pl.BlockSpec((1, 1, D), lambda b, n: (b, 0, 0)),   # scale (per batch)
            ],
            out_specs=pl.BlockSpec((1, tn, D), lambda b, n: (b, n, 0)),
        ),
        compiler_params=_mm_params(("parallel", "parallel")),
    )(x, weight.reshape(1, 1, D), shift.reshape(B, 1, D), scale.reshape(B, 1, D))


# ------------------------------------------------------------------ generic tiled linear

def _linear_kernel(*refs, has_bias):
    if has_bias:
        x_ref, w_ref, b_ref, o_ref, acc_ref = refs
    else:
        x_ref, w_ref, o_ref, acc_ref = refs
        b_ref = None
    k = pl.program_id(2)

    @pl.when(k == 0)
    def _():
        acc_ref[...] = jnp.zeros_like(acc_ref)

    acc_ref[...] += jnp.dot(x_ref[...], w_ref[...], preferred_element_type=jnp.float32)

    @pl.when(k == pl.num_programs(2) - 1)
    def _():
        acc = acc_ref[...]
        if has_bias:
            acc = acc + b_ref[...].astype(jnp.float32)
        o_ref[...] = acc.astype(o_ref.dtype)


def linear(x2d, w, b=None, *, out_dtype=None):
    """x2d @ w (+ b) with (M, N, K) tiling and an f32 VMEM accumulator."""
    M, K = x2d.shape
    K2, N = w.shape
    assert K == K2
    out_dtype = x2d.dtype if out_dtype is None else out_dtype
    has_bias = b is not None

    bk = _pick_dim_tile(K, 1024)
    bn = _pick_dim_tile(N, 512)
    sub = _sublane_multiple((x2d.dtype, out_dtype))
    fixed = 2 * bk * bn * jnp.dtype(w.dtype).itemsize
    bytes_per_row = 2 * (bk * jnp.dtype(x2d.dtype).itemsize
                         + bn * jnp.dtype(out_dtype).itemsize) + bn * 4
    bm = _pick_row_tile(M, bytes_per_row, sub, fixed_bytes=fixed, cap=512)

    in_specs = [
        pl.BlockSpec((bm, bk), lambda i, j, k: (i, k)),
        pl.BlockSpec((bk, bn), lambda i, j, k: (k, j)),
    ]
    args = [x2d, w]
    if has_bias:
        in_specs.append(pl.BlockSpec((1, bn), lambda i, j, k: (0, j)))
        args.append(b.reshape(1, N))

    return pl.pallas_call(
        partial(_linear_kernel, has_bias=has_bias),
        out_shape=jax.ShapeDtypeStruct((M, N), out_dtype),
        grid_spec=pltpu.PrefetchScalarGridSpec(
            num_scalar_prefetch=0,
            grid=(pl.cdiv(M, bm), N // bn, K // bk),
            in_specs=in_specs,
            out_specs=pl.BlockSpec((bm, bn), lambda i, j, k: (i, j)),
            scratch_shapes=[pltpu.VMEM((bm, bn), jnp.float32)],
        ),
        compiler_params=_mm_params(("parallel", "parallel", "arbitrary")),
    )(*args)


# -------------------------------------------------- fused multi-head projection (QKV / KV)

def _linear_multi_kernel(*refs, n_out):
    x_ref = refs[0]
    w_refs = refs[1:1 + n_out]
    o_refs = refs[1 + n_out:1 + 2 * n_out]
    acc_refs = refs[1 + 2 * n_out:]
    k = pl.program_id(1)

    @pl.when(k == 0)
    def _():
        for acc in acc_refs:
            acc[...] = jnp.zeros_like(acc)

    x = x_ref[...]                                            # activation read once
    for w_ref, acc in zip(w_refs, acc_refs):
        acc[...] += jnp.dot(x, w_ref[...], preferred_element_type=jnp.float32)

    @pl.when(k == pl.num_programs(1) - 1)
    def _():
        for o_ref, acc in zip(o_refs, acc_refs):
            o_ref[...] = acc[...].astype(o_ref.dtype)


def linear_multi(x2d, weights, *, out_dtype=None):
    """One pass over x computing x @ w_i for several (bias-free) weights.
    Used to fuse the q/k/v (and cross-attn k/v) projections so the activation is read
    from HBM once."""
    M, K = x2d.shape
    n_out = len(weights)
    n_feats = [w.shape[1] for w in weights]
    for w in weights:
        assert w.shape[0] == K
    out_dtype = x2d.dtype if out_dtype is None else out_dtype

    bk = _pick_dim_tile(K, 1024)
    sub = _sublane_multiple((x2d.dtype, out_dtype))
    n_tot = sum(n_feats)
    fixed = 2 * bk * n_tot * jnp.dtype(weights[0].dtype).itemsize
    bytes_per_row = 2 * (bk * jnp.dtype(x2d.dtype).itemsize
                         + n_tot * jnp.dtype(out_dtype).itemsize) + n_tot * 4
    bm = _pick_row_tile(M, bytes_per_row, sub, fixed_bytes=fixed, cap=512)
    # TODO(synk): no output-feature blocking here; fine for per-head dims, very large
    # inner dims would want an extra feature grid axis.

    in_specs = [pl.BlockSpec((bm, bk), lambda i, k: (i, k))]
    in_specs += [pl.BlockSpec((bk, n), lambda i, k: (k, 0)) for n in n_feats]
    out_specs = [pl.BlockSpec((bm, n), lambda i, k: (i, 0)) for n in n_feats]
    out_shape = [jax.ShapeDtypeStruct((M, n), out_dtype) for n in n_feats]
    scratch = [pltpu.VMEM((bm, n), jnp.float32) for n in n_feats]

    return pl.pallas_call(
        partial(_linear_multi_kernel, n_out=n_out),
        out_shape=out_shape,
        grid_spec=pltpu.PrefetchScalarGridSpec(
            num_scalar_prefetch=0,
            grid=(pl.cdiv(M, bm), K // bk),
            in_specs=in_specs,
            out_specs=out_specs,
            scratch_shapes=scratch,
        ),
        compiler_params=_mm_params(("parallel", "arbitrary")),
    )(x2d, *weights)


# ------------------------------------------ output projection fused with residual + alpha

def _proj_residual_kernel(*refs, has_bias, has_alpha):
    i = 0
    x_ref = refs[i]; i += 1
    w_ref = refs[i]; i += 1
    b_ref = None
    if has_bias:
        b_ref = refs[i]; i += 1
    res_ref = refs[i]; i += 1
    alpha_ref = None
    if has_alpha:
        alpha_ref = refs[i]; i += 1
    o_ref = refs[i]; i += 1
    acc_ref = refs[i]

    k = pl.program_id(2)

    @pl.when(k == 0)
    def _():
        acc_ref[...] = jnp.zeros_like(acc_ref)

    acc_ref[...] += jnp.dot(x_ref[0], w_ref[...], preferred_element_type=jnp.float32)

    @pl.when(k == pl.num_programs(2) - 1)
    def _():
        acc = acc_ref[...]
        if has_bias:
            acc = acc + b_ref[0].astype(jnp.float32)
        if has_alpha:
            acc = acc * alpha_ref[0].astype(jnp.float32)
        o_ref[0] = (res_ref[0].astype(jnp.float32) + acc).astype(o_ref.dtype)


def proj_residual(x3d, w, b, residual, alpha, *, out_dtype=None):
    """out = residual + alpha * (x @ w + b). Fuses the residual add and adaLN gate into
    the projection so the (B, N, D) elementwise pass never round-trips HBM."""
    B, N, K = x3d.shape
    K2, Dout = w.shape
    assert K == K2 and residual.shape == (B, N, Dout)
    out_dtype = residual.dtype if out_dtype is None else out_dtype
    has_bias = b is not None
    has_alpha = alpha is not None

    bk = _pick_dim_tile(K, 1024)
    sub = _sublane_multiple((x3d.dtype, out_dtype))
    fixed = 2 * bk * Dout * jnp.dtype(w.dtype).itemsize
    bytes_per_row = 2 * (bk * jnp.dtype(x3d.dtype).itemsize
                         + Dout * jnp.dtype(residual.dtype).itemsize
                         + Dout * jnp.dtype(out_dtype).itemsize) + Dout * 4
    bm = _pick_row_tile(N, bytes_per_row, sub, fixed_bytes=fixed, cap=512)
    # TODO(synk): output-feature (Dout) blocking would be needed for very large n_embd.

    in_specs = [
        pl.BlockSpec((1, bm, bk), lambda b_, n, k: (b_, n, k)),
        pl.BlockSpec((bk, Dout), lambda b_, n, k: (k, 0)),
    ]
    args = [x3d, w]
    if has_bias:
        in_specs.append(pl.BlockSpec((1, 1, Dout), lambda b_, n, k: (0, 0, 0)))
        args.append(b.reshape(1, 1, Dout))
    in_specs.append(pl.BlockSpec((1, bm, Dout), lambda b_, n, k: (b_, n, 0)))
    args.append(residual)
    if has_alpha:
        in_specs.append(pl.BlockSpec((1, 1, Dout), lambda b_, n, k: (b_, 0, 0)))
        args.append(alpha.reshape(B, 1, Dout))

    return pl.pallas_call(
        partial(_proj_residual_kernel, has_bias=has_bias, has_alpha=has_alpha),
        out_shape=jax.ShapeDtypeStruct((B, N, Dout), out_dtype),
        grid_spec=pltpu.PrefetchScalarGridSpec(
            num_scalar_prefetch=0,
            grid=(B, pl.cdiv(N, bm), K // bk),
            in_specs=in_specs,
            out_specs=pl.BlockSpec((1, bm, Dout), lambda b_, n, k: (b_, n, 0)),
            scratch_shapes=[pltpu.VMEM((bm, Dout), jnp.float32)],
        ),
        compiler_params=_mm_params(("parallel", "parallel", "arbitrary")),
    )(*args)


# ------------------------------------------------------------------ attention kernel

def _attention_kernel(q_ref, k_ref, v_ref, o_ref, *, scale, dim_head, heads):
    # q/k/v stay in the (seq, H*dh) HBM layout; heads are sliced in-register, so no HBM
    # transposes are needed and the MXU gets native-dtype operands.
    qb = q_ref[0]                                             # (N, H*dh)
    kb = k_ref[0]                                             # (M, H*dh)
    vb = v_ref[0]
    outs = []
    for h in range(heads):
        lo = h * dim_head
        hi = lo + dim_head
        q = qb[:, lo:hi]
        k = kb[:, lo:hi]
        v = vb[:, lo:hi]
        s = lax.dot_general(q, k, (((1,), (1,)), ((), ())),
                            preferred_element_type=jnp.float32) * scale
        s = s - jnp.max(s, axis=-1, keepdims=True)            # stable softmax (f32)
        p = jnp.exp(s)
        p = p * pl.reciprocal(jnp.sum(p, axis=-1, keepdims=True), approx=True)
        o = jnp.dot(p.astype(vb.dtype), v, preferred_element_type=jnp.float32)
        outs.append(o.astype(o_ref.dtype))
    o_ref[0] = jnp.concatenate(outs, axis=-1) if heads > 1 else outs[0]


def attention(q, k, v, *, heads, dim_head, scale, out_dtype=None):
    """softmax(q k^T * scale) v per batch, operating directly on (B, S, H*dh)."""
    B, N, inner = q.shape
    M = k.shape[1]
    assert inner == heads * dim_head and k.shape == (B, M, inner) and v.shape == (B, M, inner)
    out_dtype = q.dtype if out_dtype is None else out_dtype
    # TODO(synk): full-sequence softmax per batch block; long sequences need a KV-tiled
    # flash-style online-softmax kernel (v7x's 64 MiB VMEM hits the wall first).
    return pl.pallas_call(
        partial(_attention_kernel, scale=scale, dim_head=dim_head, heads=heads),
        out_shape=jax.ShapeDtypeStruct((B, N, inner), out_dtype),
        grid_spec=pltpu.PrefetchScalarGridSpec(
            num_scalar_prefetch=0,
            grid=(B,),
            in_specs=[
                pl.BlockSpec((1, N, inner), lambda b: (b, 0, 0)),
                pl.BlockSpec((1, M, inner), lambda b: (b, 0, 0)),
                pl.BlockSpec((1, M, inner), lambda b: (b, 0, 0)),
            ],
            out_specs=pl.BlockSpec((1, N, inner), lambda b: (b, 0, 0)),
        ),
        compiler_params=_mm_params(("parallel",)),
    )(q, k, v)


# ------------------------------------------------------------------ fused MLP gate kernel

def _mlp_gate_kernel(x_ref, w1_ref, w2_ref, o_ref, acc1_ref, acc2_ref):
    k = pl.program_id(2)

    @pl.when(k == 0)
    def _():
        acc1_ref[...] = jnp.zeros_like(acc1_ref)
        acc2_ref[...] = jnp.zeros_like(acc2_ref)

    x = x_ref[...]                                            # activation read once
    acc1_ref[...] += jnp.dot(x, w1_ref[...], preferred_element_type=jnp.float32)
    acc2_ref[...] += jnp.dot(x, w2_ref[...], preferred_element_type=jnp.float32)

    @pl.when(k == pl.num_programs(2) - 1)
    def _():
        h1 = acc1_ref[...]
        h2 = acc2_ref[...]
        o_ref[...] = (h1 * (h2 * jax.nn.sigmoid(h2))).astype(o_ref.dtype)   # x1*silu(x2)


def mlp_gate(x2d, w1, w2, *, out_dtype=None):
    """(x @ w_fc) * silu(x @ w_fc2) in a single kernel; h1/h2 never hit HBM."""
    M, K = x2d.shape
    assert w1.shape == w2.shape and w1.shape[0] == K
    Fdim = w1.shape[1]
    out_dtype = x2d.dtype if out_dtype is None else out_dtype

    bk = _pick_dim_tile(K, 1024)
    bf = _pick_dim_tile(Fdim, 512)
    sub = _sublane_multiple((x2d.dtype, out_dtype))
    fixed = 2 * 2 * bk * bf * jnp.dtype(w1.dtype).itemsize
    bytes_per_row = 2 * (bk * jnp.dtype(x2d.dtype).itemsize
                         + bf * jnp.dtype(out_dtype).itemsize) + 2 * bf * 4
    bm = _pick_row_tile(M, bytes_per_row, sub, fixed_bytes=fixed, cap=512)

    return pl.pallas_call(
        _mlp_gate_kernel,
        out_shape=jax.ShapeDtypeStruct((M, Fdim), out_dtype),
        grid_spec=pltpu.PrefetchScalarGridSpec(
            num_scalar_prefetch=0,
            grid=(pl.cdiv(M, bm), Fdim // bf, K // bk),
            in_specs=[
                pl.BlockSpec((bm, bk), lambda i, j, k: (i, k)),
                pl.BlockSpec((bk, bf), lambda i, j, k: (k, j)),
                pl.BlockSpec((bk, bf), lambda i, j, k: (k, j)),
            ],
            out_specs=pl.BlockSpec((bm, bf), lambda i, j, k: (i, j)),
            scratch_shapes=[pltpu.VMEM((bm, bf), jnp.float32),
                            pltpu.VMEM((bm, bf), jnp.float32)],
        ),
        compiler_params=_mm_params(("parallel", "parallel", "arbitrary")),
    )(x2d, w1, w2)


# ------------------------------------------------------------------ Block forward

def self_attention_block(x, h, p, alpha, *, heads, dim_head):
    """x + alpha * CrossAttention(h)  (context == h)."""
    B, N, D = h.shape
    inner = heads * dim_head
    q, k, v = linear_multi(h.reshape(B * N, D), [p["wq"], p["wk"], p["wv"]])
    o = attention(q.reshape(B, N, inner), k.reshape(B, N, inner), v.reshape(B, N, inner),
                  heads=heads, dim_head=dim_head, scale=dim_head ** -0.5)
    # to_out[0] Linear fused with residual + adaLN gate; to_out[1] Dropout is identity.
    return proj_residual(o, p["wo"], p["bo"], residual=x, alpha=alpha)


def cross_attention_block(x, ctx, p, *, heads, dim_head):
    """x + CrossAttention(x, ctx)."""
    B, N, D = x.shape
    Bc, M, Dc = ctx.shape
    inner = heads * dim_head
    q = linear(x.reshape(B * N, D), p["wq"]).reshape(B, N, inner)
    k, v = linear_multi(ctx.reshape(Bc * M, Dc), [p["wk"], p["wv"]])
    o = attention(q, k.reshape(B, M, inner), v.reshape(B, M, inner),
                  heads=heads, dim_head=dim_head, scale=dim_head ** -0.5)
    return proj_residual(o, p["wo"], p["bo"], residual=x, alpha=None)


def mlp_block(x, h, p, alpha):
    """x + alpha * MLP(h) with the SwiGLU gate fused into the FC pass."""
    B, N, D = h.shape
    g = mlp_gate(h.reshape(B * N, D), p["w_fc"], p["w_fc2"])
    Fdim = g.shape[1]
    return proj_residual(g.reshape(B, N, Fdim), p["w_proj"], None, residual=x, alpha=alpha)


def block_forward(params, x, ctx, t_emb, pos_emb, *, heads, dim_head, eps=1e-6, mask=None):
    if mask is not None:
        # TODO(synk): attention mask path not implemented in the Pallas attention kernel
        # (Block.forward default is mask=None).
        raise NotImplementedError("mask is not supported in the Pallas attention path")

    mod = linear(jax.nn.silu(t_emb), params["adaLN_w"], params["adaLN_b"])    # (B, 6D)
    shift1, scale1, alpha1, shift2, scale2, alpha2 = jnp.split(mod, 6, axis=1)

    x = x + pos_emb   # TODO(synk): could fold into rmsnorm_modulate for one fewer HBM pass
    h = rmsnorm_modulate(x, params["rms1_w"], shift1, scale1, eps=eps)
    x = self_attention_block(x, h, params["attn"], alpha1, heads=heads, dim_head=dim_head)
    x = cross_attention_block(x, ctx, params["xattn"], heads=heads, dim_head=dim_head)
    h = rmsnorm_modulate(x, params["rms2_w"], shift2, scale2, eps=eps)
    x = mlp_block(x, h, params["mlp"], alpha2)
    return x


# ------------------------------------------------------------------ pure-JAX reference

def _rmsnorm_ref(x, w, eps):
    xf = x.astype(jnp.float32)
    n = (xf * lax.rsqrt(jnp.mean(xf * xf, axis=-1, keepdims=True) + eps)).astype(x.dtype)
    return n * w


def _modulate_ref(x, shift, scale):
    return x * (1.0 + scale[:, None, :]) + shift[:, None, :]


def _attn_ref(x, context, p, heads, dim_head):
    B, N, D = x.shape
    c = x if context is None else context
    M = c.shape[1]
    q = x @ p["wq"]
    k = c @ p["wk"]
    v = c @ p["wv"]
    q = q.reshape(B, N, heads, dim_head).transpose(0, 2, 1, 3)
    k = k.reshape(B, M, heads, dim_head).transpose(0, 2, 1, 3)
    v = v.reshape(B, M, heads, dim_head).transpose(0, 2, 1, 3)
    s = jnp.einsum("bhqd,bhkd->bhqk", q, k) * (dim_head ** -0.5)
    a = jax.nn.softmax(s, axis=-1)
    o = jnp.einsum("bhqk,bhkd->bhqd", a, v)
    o = o.transpose(0, 2, 1, 3).reshape(B, N, heads * dim_head)
    return o @ p["wo"] + p["bo"]


def block_ref(params, x, ctx, t_emb, pos_emb, *, heads, dim_head, eps=1e-6):
    mod = jax.nn.silu(t_emb) @ params["adaLN_w"] + params["adaLN_b"]
    s1, sc1, a1, s2, sc2, a2 = jnp.split(mod, 6, axis=1)
    x = x + pos_emb
    h = _modulate_ref(_rmsnorm_ref(x, params["rms1_w"], eps), s1, sc1)
    x = x + a1[:, None, :] * _attn_ref(h, None, params["attn"], heads, dim_head)
    x = x + _attn_ref(x, ctx, params["xattn"], heads, dim_head)
    h = _modulate_ref(_rmsnorm_ref(x, params["rms2_w"], eps), s2, sc2)
    h1 = h @ params["mlp"]["w_fc"]
    h2 = h @ params["mlp"]["w_fc2"]
    x = x + a2[:, None, :] * ((h1 * jax.nn.silu(h2)) @ params["mlp"]["w_proj"])
    return x


# ------------------------------------------------------------------ demo / self-test

if __name__ == "__main__":
    key = jax.random.PRNGKey(0)
    B, N, NC = 2, 8, 8            # batch, x tokens, context tokens
    D, H, DH, FF = 32, 4, 16, 64  # n_embd, n_head, dim_head, ffn_dim
    eps = 1e-6

    ks = list(jax.random.split(key, 20))

    def w_init(k, shape):
        return jax.random.normal(k, shape, jnp.float32) * (shape[0] ** -0.5)

    params = {
        "rms1_w": jnp.ones((D,), jnp.float32),     # torch.ones(dim)
        "rms2_w": jnp.ones((D,), jnp.float32),
        "adaLN_w": w_init(ks[0], (D, 6 * D)),
        "adaLN_b": jnp.zeros((6 * D,), jnp.float32),
        "attn": {
            "wq": w_init(ks[1], (D, H * DH)),
            "wk": w_init(ks[2], (D, H * DH)),
            "wv": w_init(ks[3], (D, H * DH)),
            "wo": w_init(ks[4], (H * DH, D)),
            "bo": jnp.zeros((D,), jnp.float32),
        },
        "xattn": {
            "wq": w_init(ks[5], (D, H * DH)),
            "wk": w_init(ks[6], (D, H * DH)),
            "wv": w_init(ks[7], (D, H * DH)),
            "wo": w_init(ks[8], (H * DH, D)),
            "bo": jnp.zeros((D,), jnp.float32),
        },
        "mlp": {
            "w_fc": w_init(ks[9], (D, FF)),
            "w_fc2": w_init(ks[10], (D, FF)),
            "w_proj": w_init(ks[11], (FF, D)),
        },
    }

    x = jax.random.normal(ks[12], (B, N, D), jnp.float32)
    ctx = jax.random.normal(ks[13], (B, NC, D), jnp.float32)
    t_emb = jax.random.normal(ks[14], (B, D), jnp.float32)
    pos_emb = jax.random.normal(ks[15], (1, N, D), jnp.float32) * 0.02

    # Unit check for the fused norm+modulate kernel (no matmul -> tight tolerance).
    shift = jax.random.normal(ks[16], (B, D), jnp.float32)
    scale = jax.random.normal(ks[17], (B, D), jnp.float32)
    rm = rmsnorm_modulate(x, params["rms1_w"], shift, scale, eps=eps)
    rm_ref = _modulate_ref(_rmsnorm_ref(x, params["rms1_w"], eps), shift, scale)
    assert rm.shape == x.shape
    assert jnp.allclose(rm, rm_ref, atol=1e-5, rtol=1e-5)

    # Full Block forward vs pure-JAX reference (matmul-precision-limited tolerance).
    out = block_forward(params, x, ctx, t_emb, pos_emb, heads=H, dim_head=DH, eps=eps)
    out = jax.block_until_ready(out)
    ref = block_ref(params, x, ctx, t_emb, pos_emb, heads=H, dim_head=DH, eps=eps)

    assert out.shape == x.shape, (out.shape, x.shape)
    max_err = float(jnp.max(jnp.abs(out - ref)))
    assert jnp.allclose(out, ref, atol=3e-2, rtol=3e-2), f"mismatch vs reference, max abs err={max_err}"

    print("KERNEL_OK")
</pallas_src>

<mosaic_0001>
module attributes {stable_mosaic.version = 11 : i64} {
  func.func @_rmsnorm_modulate_kernel(%arg0: i32, %arg1: i32, %arg2: memref<1x8x32xf32, #tpu.memory_space<vmem>>, %arg3: memref<1x1x32xf32, #tpu.memory_space<vmem>>, %arg4: memref<1x1x32xf32, #tpu.memory_space<vmem>>, %arg5: memref<1x1x32xf32, #tpu.memory_space<vmem>>, %arg6: memref<1x8x32xf32, #tpu.memory_space<vmem>>) attributes {dimension_semantics = [#tpu.dimension_semantics<parallel>, #tpu.dimension_semantics<parallel>], iteration_bounds = array<i64: 2, 1>, scalar_prefetch = 0 : i64, scratch_operands = 0 : i64, tpu.core_type = #tpu.core_type<tc>, window_params = [{transform_indices = @transform_0, window_bounds = array<i64: 1, 8, 32>}, {pipeline_mode = #tpu.pipeline_mode<synchronous>, transform_indices = @transform_1, window_bounds = array<i64: 1, 1, 32>}, {transform_indices = @transform_2, window_bounds = array<i64: 1, 1, 32>}, {transform_indices = @transform_3, window_bounds = array<i64: 1, 1, 32>}, {transform_indices = @transform_4, window_bounds = array<i64: 1, 8, 32>}]} {
    %c0 = arith.constant 0 : index
    %c0_0 = arith.constant 0 : index
    %c0_1 = arith.constant 0 : index
    %0 = vector.load %arg2[%c0, %c0_0, %c0_1] : memref<1x8x32xf32, #tpu.memory_space<vmem>>, vector<1x8x32xf32>
    %1 = arith.mulf %0, %0 : vector<1x8x32xf32>
    %cst = arith.constant dense<0.000000e+00> : vector<1x8xf32>
    %2 = vector.multi_reduction <add>, %1, %cst [2] : vector<1x8x32xf32> to vector<1x8xf32>
    %3 = vector.shape_cast %2 : vector<1x8xf32> to vector<1x8x1xf32>
    %cst_2 = arith.constant 3.200000e+01 : f32
    %4 = vector.broadcast %cst_2 : f32 to vector<1x8x1xf32>
    %5 = arith.divf %3, %4 : vector<1x8x1xf32>
    %cst_3 = arith.constant 9.99999997E-7 : f32
    %6 = vector.broadcast %cst_3 : f32 to vector<1x8x1xf32>
    %7 = arith.addf %5, %6 : vector<1x8x1xf32>
    %8 = math.rsqrt %7 : vector<1x8x1xf32>
    %9 = vector.broadcast %8 : vector<1x8x1xf32> to vector<1x8x32xf32>
    %10 = arith.mulf %0, %9 : vector<1x8x32xf32>
    %c0_4 = arith.constant 0 : index
    %c0_5 = arith.constant 0 : index
    %c0_6 = arith.constant 0 : index
    %11 = vector.load %arg3[%c0_4, %c0_5, %c0_6] : memref<1x1x32xf32, #tpu.memory_space<vmem>>, vector<1x1x32xf32>
    %12 = vector.broadcast %11 : vector<1x1x32xf32> to vector<1x8x32xf32>
    %13 = arith.mulf %10, %12 : vector<1x8x32xf32>
    %c0_7 = arith.constant 0 : index
    %c0_8 = arith.constant 0 : index
    %c0_9 = arith.constant 0 : index
    %14 = vector.load %arg5[%c0_7, %c0_8, %c0_9] : memref<1x1x32xf32, #tpu.memory_space<vmem>>, vector<1x1x32xf32>
    %cst_10 = arith.constant 1.000000e+00 : f32
    %15 = vector.broadcast %cst_10 : f32 to vector<1x1x32xf32>
    %16 = arith.addf %15, %14 : vector<1x1x32xf32>
    %17 = vector.broadcast %16 : vector<1x1x32xf32> to vector<1x8x32xf32>
    %18 = arith.mulf %13, %17 : vector<1x8x32xf32>
    %c0_11 = arith.constant 0 : index
    %c0_12 = arith.constant 0 : index
    %c0_13 = arith.constant 0 : index
    %19 = vector.load %arg4[%c0_11, %c0_12, %c0_13] : memref<1x1x32xf32, #tpu.memory_space<vmem>>, vector<1x1x32xf32>
    %20 = vector.broadcast %19 : vector<1x1x32xf32> to vector<1x8x32xf32>
    %21 = arith.addf %18, %20 : vector<1x8x32xf32>
    %c0_14 = arith.constant 0 : index
    %c0_15 = arith.constant 0 : index
    %c0_16 = arith.constant 0 : index
    %22 = vector.load %arg6[%c0_14, %c0_15, %c0_16] : memref<1x8x32xf32, #tpu.memory_space<vmem>>, vector<1x8x32xf32>
    tpu.vector_store %arg6[%c0_14, %c0_15, %c0_16], %21 {strides = array<i32>} : memref<1x8x32xf32, #tpu.memory_space<vmem>>, vector<1x8x32xf32>,
    return
  }
  func.func @transform_0(%arg0: i32, %arg1: i32) -> (i32, i32, i32) {
    %c0_i32 = arith.constant 0 : i32
    %c0_i32_0 = arith.constant 0 : i32
    return %arg0, %arg1, %c0_i32 : i32, i32, i32
  }
  func.func @transform_1(%arg0: i32, %arg1: i32) -> (i32, i32, i32) {
    %c0_i32 = arith.constant 0 : i32
    %c0_i32_0 = arith.constant 0 : i32
    %c0_i32_1 = arith.constant 0 : i32
    %c0_i32_2 = arith.constant 0 : i32
    return %c0_i32, %c0_i32_0, %c0_i32_1 : i32, i32, i32
  }
  func.func @transform_2(%arg0: i32, %arg1: i32) -> (i32, i32, i32) {
    %c0_i32 = arith.constant 0 : i32
    %c0_i32_0 = arith.constant 0 : i32
    %c0_i32_1 = arith.constant 0 : i32
    return %arg0, %c0_i32, %c0_i32_0 : i32, i32, i32
  }
  func.func @transform_3(%arg0: i32, %arg1: i32) -> (i32, i32, i32) {
    %c0_i32 = arith.constant 0 : i32
    %c0_i32_0 = arith.constant 0 : i32
    %c0_i32_1 = arith.constant 0 : i32
    return %arg0, %c0_i32, %c0_i32_0 : i32, i32, i32
  }
  func.func @transform_4(%arg0: i32, %arg1: i32) -> (i32, i32, i32) {
    %c0_i32 = arith.constant 0 : i32
    %c0_i32_0 = arith.constant 0 : i32
    return %arg0, %arg1, %c0_i32 : i32, i32, i32
  }
}

</mosaic_0001>

<bundles_post_ra>
// kernel: tpu_custom_call.1
= control target key start
LH: loop header
LB: loop body
LE: loop exit
PB: predicated region body
PF: predicated region fallthrough
CT: control target
= control target key end

     0   :  { %9 = vsyncpa [#allocation3], 0  ;;  %s817_s0 = inlined_call_operand.hbm [shape: f32[2,8,32], index: 0, kind: input, shape index: {}]   ;;  %s818_s1 = inlined_call_operand.vmem [shape: f32[1,1,32], index: 1, kind: input, shape index: {}]   ;;  %s819_s2 = inlined_call_operand.vmem [shape: f32[2,1,32], index: 2, kind: input, shape index: {}]   ;;  %s820_s3 = inlined_call_operand.vmem [shape: f32[2,1,32], index: 3, kind: input, shape index: {}]   ;;  %s821_s4 = inlined_call_operand.hbm [shape: f32[2,8,32], index: 4, kind: output, shape index: {}]  }
   0x1   :  { %11 = vsyncpa [#allocation3 + $0x1], 0 }
   0x2   :  { %12 = vsyncpa [#allocation4], 0 }
   0x3   :  { %14 = vsyncpa [#allocation4 + $0x1], 0  ;;  %s628_s15 = smov 0   ;;  %s630_s16 = smov 0  }
   0x4   :  { %s632_s17 = smov 0   ;;  %s634_s18 = smov 0  }
   0x5   :  { %s636_s19 = smov 0   ;;  %s638_s20 = smov 0  }
   0x6 LB: > { %s408_s21 = sadd.s32 4294967295, %s599_s20   ;;  %s409_s22 = sadd.s32 4294967294, %s599_s20   ;;  %s599_s20 = sphi %s638_s20, %s20_s20   ;;  %s595_s19 = sphi %s636_s19, %s837_s19   ;;  %s591_s18 = sphi %s634_s18, %s836_s18   ;;  %s587_s17 = sphi %s632_s17, %s835_s17   ;;  %s583_s16 = sphi %s630_s16, %s834_s16   ;;  %s579_s15 = sphi %s628_s15, %s833_s15  }
   0x7   : > { %s32_s23 = sadd.s32 1, %s595_s19  ;;  %s41_s24 = sadd.s32 1, %s587_s17 }
   0x8   : > { %p34_p0 = scmp.ge.s32.totalorder %s32_s23, 2  ;;  %p48_p1 = scmp.ne.s32.totalorder %s587_s17, %s583_s16 }
   0x9   : > { %p49_p2 = scmp.eq.s32.totalorder %s599_s20, 0  ;;  %p54_p3 = scmp.ne.s32.totalorder %s583_s16, %s579_s15 }
   0xa   : > { %s839_s23 = smov (%p34_p0, %s32_s23), 0  ;;  %p55_p5 = scmp.eq.s32.totalorder %s408_s21, 0 }
   0xb   : > { %p669_p4 = por %p49_p2, %p48_p1  ;;  %s36_s26 = ssub.s32 %s595_s19, %s839_s23 }
   0xc   : > { %p153_p6 = scmp.eq.s32.totalorder %s408_s21, 1  ;;  %p39_p7 = scmp.eq.s32.totalorder %s36_s26, 0 }
   0xd   : > { %p675_p8 = por %p55_p5, %p54_p3  ;;  %p159_p10 = scmp.eq.s32.totalorder %s409_s22, 1 }
   0xe   : > { %p679_p9 = por %p153_p6, %p48_p1  ;;  %p435_p13 = scmp.lt.s32.totalorder %s599_s20, 2 }
   0xf   : > { %s684_s29 = scalar_select %p39_p7, %s587_s17, %s41_s24  }
  0x10   : > { %s825_s28 = scalar_select %p679_p9, 1, 0 }
  0x11   : > { %p686_p11 = por %p159_p10, %p54_p3  ;;  %s182_s5 = sand.u32 1, %s587_s17  }
  0x12   : > { %s412_s6 = sshll.u32 %s182_s5, 3  ;;  %s413_s7 = sshll.u32 %s595_s19, 7 }
  0x13   : > { %s826_s30 = scalar_select %p686_p11, 1, 0 }
  0x14   : > { %s697_s10 = scalar_lea.hbm %s817_s0, %s413_s7  ;;  %s186_s11 = scalar_lea.vmem [#allocation2], %s412_s6 }
  0x15   : > { %s194_s12 = sshll.u32 %s186_s11, 4  ;;  %p703_p0 = pnand %p435_p13, %p669_p4  ;;  %s699_s12 = int_to_ptr.vmem [resolvable:$true] %s194_s12 }
  0x16   : > { %s183_s14 = scalar_lea.sflag [#allocation3], %s182_s5  ;;  %s487_s21 = scalar_lea.hbm %s697_s10, 128 }
  0x17   : > { %p488_p3 = scmp.ne.s32.totalorder %s697_s10, %s487_s21  ;;  %p489_p5 = pneg %p703_p0 }
  0x18   : > { %s492_s25 = scalar_lea.hbm %s817_s0, 256  ;;  %p493_p4 = scmp.lt.u32.totalorder %s697_s10, %s817_s0 }
  0x19   : > { %p490_p6 = pnand %p489_p5, %p488_p3  ;;  %p494_p10 = scmp.lt.u32.totalorder %s492_s25, %s487_s21 }
  0x1a   : > { %p496_p12 = scmp.lt.u32.totalorder %s487_s21, %s697_s10 }
  0x1b   : > { %p491_p7 = pneg %p490_p6  ;;  %p495_p13 = por %p494_p10, %p493_p4 }
  0x1d   : > { %p497_p1 = por %p496_p12, %p495_p13 }
  0x1f   : > { %p498_p2 = pnand %p497_p1, %p491_p7 }
  0x21   : > { %501 = shalt.err (!%p498_p2)
}
  0x22   : > { %s502_s5 = scalar_lea.vmem %s699_s12, 128  ;;  %s601_s7 = smov [#allocation2]  }
  0x23   : > { %p503_p3 = scmp.ne.s32.totalorder %s699_s12, %s502_s5  ;;  %s507_s8 = sshll.u32 %s601_s7, 4  ;;  %s508_s8 = int_to_ptr.vmem [resolvable:$false] %s507_s8 }
  0x24   : > { %s509_s9 = scalar_lea.vmem %s508_s8, 256  ;;  %p510_p9 = scmp.lt.s32.totalorder %s699_s12, %s508_s8 }
  0x25   : > { %p505_p6 = pnand %p503_p3, %p489_p5  ;;  %p511_p4 = scmp.lt.s32.totalorder %s509_s9, %s502_s5 }
  0x27   : > { %p506_p11 = pneg %p505_p6  ;;  %p512_p10 = por %p511_p4, %p510_p9 }
  0x29   : > { %p513_p12 = pnand %p512_p10, %p506_p11 }
  0x2b   : > { %516 = shalt.err (!%p513_p12)
}
  0x2c   : > { %430 = dma.hbm_to_vmem [thread:$0]  (!%p703_p0), %s697_s10, 128, %s699_s12, %s183_s14  }
  0x2d   : > { %p828_p1 = scmp.lt.s32.totalorder %s599_s20, 3  ;;  %p829_p2 = scmp.ge.s32.totalorder %s599_s20, 1 }
  0x2f   : > { %p212_p5 = pnand %p829_p2, %p828_p1 }
  0x30   : > { %s739_s11 = sand.u32 (!%p212_p5), 1, %s583_s16  }
  0x31   : > { %215 = sbr.rel (%p212_p5) target bundleno = 240 (0xf0), region = 36  ;;  %s415_s21 = sshll.u32 (!%p212_p5), %s739_s11, 3 }
  0x32   : > { %s218_s22 = scalar_lea.sflag (!%p212_p5), [#allocation3], %s739_s11  ;;  %s221_s13 = scalar_lea.vmem (!%p212_p5), [#allocation2], %s415_s21 }
  0x38   : > { %570 = dma.done.wait (%p675_p8), %s218_s22, 128  }
  0x39   : > { %572 = vsyncadd (%p675_p8), %s218_s22, 4294967168  ;;  %v258_v0 = vld [vmem:[%s221_s13] sm:$0xff]  ;;  %vm260_vm0 = vcmask 261120   ;;  %p252_p9 = scmp.lt.s32.totalorder %s591_s18, 1  ;;  %v280_v6 = vlaneseq  ;;  %s420_s7 = sshll.u32 %s591_s18, 7 }
  0x3a   : > { %v259_v1 = vmul.f32 %v258_v0, %v258_v0  ;;  %v417_v12 = vld [vmem:[%s818_s1] ss:$0 sm:$0xff]  ;;  %s251_s8 = scalar_lea.vmem [#allocation5], %s415_s21  ;;  %s767_s12 = scalar_lea.hbm %s821_s4, %s420_s7 }
  0x3b   : > { %s253_s10 = scalar_select %p252_p9, %s591_s18, 1  ;;  %v281_v7 = vshrl.u32 %v280_v6, 7 }
  0x3c   : > { %v261_v2 = vsel %vm260_vm0, %v259_v1, 0.0  ;;  %s310_s9 = sshll.u32 %s251_s8, 4  ;;  %p830_p11 = scmp.ne.s32.totalorder %s825_s28, 0  ;;  %s769_s9 = int_to_ptr.vmem [resolvable:$true] %s310_s9 }
  0x3d   : > { %262 = vadd.xlane.f32.xlu0 %v261_v2  ;;  %s257_s14 = scalar_lea.vmem %s820_s3, %s253_s10  ;;  %v282_v10 = vsub.s32 0, %v281_v7  ;;  %s254_s5 = scalar_lea.vmem %s819_s2, %s253_s10 }
  0x3e   : > { %v277_v8 = vld [vmem:[%s257_s14] sm:$0x1]  ;;  %s296_s10 = scalar_lea.sflag [#allocation4], %s739_s11  ;;  %s517_s27 = scalar_lea.vmem %s769_s9, 128 }
  0x3f   : > { %v278_v9 = vadd.f32 1.0, %v277_v8  ;;  %v418_v16 = vld [vmem:[%s254_s5] ss:$0 sm:$0xff]  ;;  %p518_p8 = scmp.ne.s32.totalorder %s769_s9, %s517_s27  ;;  %s602_s18 = smov [#allocation5]  }
  0x40   : > { %s521_s21 = sshll.u32 %s602_s18, 4  ;;  %s522_s21 = int_to_ptr.vmem [resolvable:$false] %s521_s21 }
  0x41   : > { %v283_v14 = vrot.slane %v278_v9, %v282_v10  ;;  %p519_p0 = pnand %p518_p8, %p830_p11  ;;  %s523_s14 = scalar_lea.vmem %s522_s21, 256 }
  0x42   : > { %p524_p13 = scmp.lt.s32.totalorder %s769_s9, %s522_s21  ;;  %p525_p3 = scmp.lt.s32.totalorder %s523_s14, %s517_s27 }
  0x43   : > { %p520_p7 = pneg %p519_p0 }
  0x44   : > { %p526_p6 = por %p525_p3, %p524_p13 }
  0x46   : > { %p527_p4 = pnand %p526_p6, %p520_p7 }
  0xca   : > { %v263_v3 = vpop.xlane.xlu0 %262 }
  0xcb   : > { %v265_v4 = vmul.f32 0.03125, %v263_v3 }
  0xcd   : > { %v266_v5 = vadd.f32 1e-06, %v265_v4 }
  0xcf   : > { %485 = vrsqrt.f32 %v266_v5 }
  0xd9   : > { %v486_v11 = vpop.eup %485 }
  0xda   : > { %v268_v13 = vmul.f32 %v486_v11, %v258_v0 }
  0xdc   : > { %v276_v15 = vmul.f32 %v417_v12, %v268_v13 }
  0xde   : > { %v285_v17 = vmul.f32 %v283_v14, %v276_v15 }
  0xe0   : > { %v293_v18 = vadd.f32 %v418_v16, %v285_v17 }
  0xe2   : > { %294 = vst.msk [vmem:[%s251_s8] sm:$0xff] %vm260_vm0, %v293_v18 }
  0xe3   : > { %530 = shalt.err (!%p527_p4)
}
  0xe4   : > { %s531_s11 = scalar_lea.hbm %s767_s12, 128  ;;  %s535_s26 = scalar_lea.hbm %s821_s4, 256 }
  0xe5   : > { %p532_p10 = scmp.ne.s32.totalorder %s767_s12, %s531_s11  ;;  %p536_p2 = scmp.lt.u32.totalorder %s767_s12, %s821_s4 }
  0xe6   : > { %p537_p5 = scmp.lt.u32.totalorder %s535_s26, %s531_s11  ;;  %p539_p8 = scmp.lt.u32.totalorder %s531_s11, %s767_s12 }
  0xe7   : > { %p533_p12 = pnand %p532_p10, %p830_p11 }
  0xe8   : > { %p538_p9 = por %p537_p5, %p536_p2 }
  0xe9   : > { %p534_p1 = pneg %p533_p12 }
  0xea   : > { %p540_p0 = por %p539_p8, %p538_p9 }
  0xec   : > { %p541_p7 = pnand %p540_p0, %p534_p1 }
  0xee   : > { %544 = shalt.err (!%p541_p7)
}
  0xef   : > { %425 = dma.vmem_to_hbm [thread:$0]  (%p830_p11), %s769_s9, 128, %s767_s12, %s296_s10  }
  0xf0 PF: > { %s322_s7 = sand.u32 1, %s579_s15   ;;  %p831_p13 = scmp.ne.s32.totalorder %s826_s30, 0 }
  0xf1   : > { %p832_p3 = scmp.ge.s32.totalorder %s599_s20, 2  ;;  %s323_s8 = scalar_lea.sflag [#allocation4], %s322_s7 }
  0xf3   : > { %p432_p6 = pnand %p832_p3, %p831_p13 }
  0xf5   : > { %574 = dma.done.wait (!%p432_p6), %s323_s8, 128  }
  0xf6   : > { %576 = vsyncadd (!%p432_p6), %s323_s8, 4294967168  ;;  %s20_s20 = sadd.s32 1, %s599_s20   ;;  %s833_s15 = smov %s583_s16 }
  0xf7   : > { %p17_p4 = scmp.ge.s32.totalorder %s20_s20, 4   ;;  %s834_s16 = smov %s587_s17 }
  0xf8   : > { %s835_s17 = smov %s684_s29  ;;  %s836_s18 = smov %s595_s19 }
  0xf9   : > { %s837_s19 = smov %s839_s23  ;;  %19 = sbr.rel (!%p17_p4) target bundleno = 6 (0x6), region = 87 }
 0x100   :  { %328 = vsyncpa [#allocation3], 1 }
 0x101   :  { %330 = vsyncpa [#allocation3 + $0x1], 1 }
 0x102   :  { %331 = vsyncpa [#allocation4], 1 }
 0x103   :  { %333 = vsyncpa [#allocation4 + $0x1], 1 }

</bundles_post_ra>
